<compile_context>
chip_gen: v7x
topology: tpu7x:2x2x1
jax: 0.10.0
libtpu: 0.0.40
codegen_flags: <defaults>
</compile_context>

<pallas_src>
import numpy as np
import jax
import jax.numpy as jnp
from jax.experimental import pallas as pl
from jax.experimental.pallas import tpu as pltpu


def _build_pe_table(d_model: int, max_len: int = 500) -> jnp.ndarray:
    """Deterministic sinusoidal positional-encoding table, shape (max_len, d_model)."""
    position = np.arange(0, max_len, dtype=np.float32)[:, None]            # (max_len, 1)
    div_term = np.exp(np.arange(0, d_model, 2, dtype=np.float32)
                      * (-np.log(10000.0) / d_model))                      # (ceil(d/2),)
    pe = np.zeros((max_len, d_model), dtype=np.float32)
    pe[:, 0::2] = np.sin(position * div_term)
    pe[:, 1::2] = np.cos(position * div_term)
    return jnp.asarray(pe)


def _cdiv(a: int, b: int) -> int:
    return -(-a // b)


def _choose_layout(S: int, D: int):
    """View the (S, D) plane as (rows, cols) with a lane-dense (mult-of-128) cols."""
    if D % 128 == 0:
        return S, D
    n = S * D
    for c in (1024, 512, 256, 128):
        if n % c == 0:
            return n // c, c
    return S, D  # fallback: masked stores (D < 128, not factorable) but still correct


def _choose_row_tile(rows: int, cols: int, target_bytes: int):
    """Largest multiple-of-8 row tile with tile_bytes ~= target (f32)."""
    tr = (target_bytes // (cols * 4)) // 8 * 8
    tr = max(tr, 8)
    if tr >= rows:
        return rows, 1          # single tile: block == full row extent (always legal)
    return tr, _cdiv(rows, tr)


def _make_kernel(tr: int, nt: int):
    if nt == 1:
        def kernel(x_ref, pe_ref, o_ref):
            # x_ref/o_ref/pe_ref all (rows, cols): plain VPU add, no broadcast.
            o_ref[...] = x_ref[...] + pe_ref[...]
    else:
        def kernel(x_ref, pe_ref, o_ref):
            # x_ref/o_ref: (tr, cols) tile; pe_ref: full resident (rows_pad, cols).
            r = pl.program_id(1)
            start = pl.multiple_of(r * tr, tr)   # tr is a multiple of 8 here
            o_ref[...] = x_ref[...] + pe_ref[pl.ds(start, tr), :]
    return kernel


def positional_encoding_forward(x: jnp.ndarray, pe_table: jnp.ndarray,
                                target_block_bytes: int = 2 << 20) -> jnp.ndarray:
    """x: (B, S, D); pe_table: (max_len, D). Returns x + pe_table[None, :S, :]."""
    B, S, D = x.shape
    rows, cols = _choose_layout(S, D)
    tr, nt = _choose_row_tile(rows, cols, target_block_bytes)
    rows_pad = tr * nt

    # Layout plumbing (contiguous reshapes, no compute): lane-dense 2-D slab per batch.
    x2 = x.reshape(B, rows, cols)
    pe2 = pe_table[:S, :].reshape(rows, cols).astype(x.dtype)
    if rows_pad > rows:
        # Pad the resident PE slab so the in-kernel pl.ds slice is never OOB
        # (x's ragged last tile is handled by Pallas block padding / masked writeback).
        pe2 = jnp.pad(pe2, ((0, rows_pad - rows), (0, 0)))

    out = pl.pallas_call(
        _make_kernel(tr, nt),
        out_shape=jax.ShapeDtypeStruct((B, rows, cols), x.dtype),
        grid_spec=pltpu.PrefetchScalarGridSpec(
            num_scalar_prefetch=0,
            grid=(B, nt),
            in_specs=[
                # x: squeezed batch dim, (tr, cols) tile per grid step.
                pl.BlockSpec((None, tr, cols), lambda b, r: (b, r, 0)),
                # pe: whole slab, constant block index -> DMA'd once, stays resident.
                pl.BlockSpec((rows_pad, cols), lambda b, r: (0, 0)),
            ],
            out_specs=pl.BlockSpec((None, tr, cols), lambda b, r: (b, r, 0)),
        ),
        compiler_params=pltpu.CompilerParams(
            dimension_semantics=("parallel", "parallel"),   # both axes independent
            vmem_limit_bytes=32 * 1024 * 1024,
        ),
        # NOTE: could add input_output_aliases={0: 0} to add in place on x's HBM
        # buffer (halves footprint, same traffic); left out to keep x intact here.
    )(x2, pe2)
    return out.reshape(B, S, D)


if __name__ == "__main__":
    MAX_LEN = 500
    key = jax.random.PRNGKey(0)

    # 1) Module-consistent small shape (batch=2, seq=8, hidden=32): single-tile path.
    B, S, D = 2, 8, 32
    x = jax.random.normal(key, (B, S, D), dtype=jnp.float32)
    pe_table = _build_pe_table(D, MAX_LEN)
    out = jax.block_until_ready(positional_encoding_forward(x, pe_table))
    ref = x + pe_table[None, :S, :]
    np.testing.assert_allclose(np.asarray(out), np.asarray(ref), rtol=1e-6, atol=1e-6)

    # 2) Exercise the multi-tile (dynamic pe slice) path with a tiny block budget.
    B2, S2, D2 = 2, 40, 128
    x2 = jax.random.normal(jax.random.PRNGKey(0), (B2, S2, D2), dtype=jnp.float32)
    pe_table2 = _build_pe_table(D2, MAX_LEN)
    out2 = jax.block_until_ready(
        positional_encoding_forward(x2, pe_table2, target_block_bytes=4096))
    ref2 = x2 + pe_table2[None, :S2, :]
    np.testing.assert_allclose(np.asarray(out2), np.asarray(ref2), rtol=1e-6, atol=1e-6)

    # 3) Ragged row count (rows % tile != 0): padded pe + masked writeback path.
    B3, S3, D3 = 2, 36, 128
    x3 = jax.random.normal(jax.random.PRNGKey(0), (B3, S3, D3), dtype=jnp.float32)
    pe_table3 = _build_pe_table(D3, MAX_LEN)
    out3 = jax.block_until_ready(
        positional_encoding_forward(x3, pe_table3, target_block_bytes=4096))
    ref3 = x3 + pe_table3[None, :S3, :]
    np.testing.assert_allclose(np.asarray(out3), np.asarray(ref3), rtol=1e-6, atol=1e-6)

    print("KERNEL_OK")
</pallas_src>

<mosaic_0001>
module attributes {stable_mosaic.version = 11 : i64} {
  func.func @kernel(%arg0: i32, %arg1: i32, %arg2: memref<1x1x256xf32, #tpu.memory_space<vmem>>, %arg3: memref<1x256xf32, #tpu.memory_space<vmem>>, %arg4: memref<1x1x256xf32, #tpu.memory_space<vmem>>) attributes {dimension_semantics = [#tpu.dimension_semantics<parallel>, #tpu.dimension_semantics<parallel>], iteration_bounds = array<i64: 2, 1>, scalar_prefetch = 0 : i64, scratch_operands = 0 : i64, tpu.core_type = #tpu.core_type<tc>, window_params = [{transform_indices = @transform_0, window_bounds = array<i64: 1, 1, 256>}, {pipeline_mode = #tpu.pipeline_mode<synchronous>, transform_indices = @transform_1, window_bounds = array<i64: 1, 256>}, {transform_indices = @transform_2, window_bounds = array<i64: 1, 1, 256>}]} {
    %c0 = arith.constant 0 : index
    %c0_0 = arith.constant 0 : index
    %c0_1 = arith.constant 0 : index
    %0 = vector.load %arg2[%c0, %c0_0, %c0_1] : memref<1x1x256xf32, #tpu.memory_space<vmem>>, vector<1x1x256xf32>
    %1 = vector.shape_cast %0 : vector<1x1x256xf32> to vector<1x256xf32>
    %c0_2 = arith.constant 0 : index
    %c0_3 = arith.constant 0 : index
    %2 = vector.load %arg3[%c0_2, %c0_3] : memref<1x256xf32, #tpu.memory_space<vmem>>, vector<1x256xf32>
    %3 = arith.addf %1, %2 : vector<1x256xf32>
    %c0_4 = arith.constant 0 : index
    %c0_5 = arith.constant 0 : index
    %c0_6 = arith.constant 0 : index
    %4 = vector.load %arg4[%c0_4, %c0_5, %c0_6] : memref<1x1x256xf32, #tpu.memory_space<vmem>>, vector<1x1x256xf32>
    %5 = vector.shape_cast %4 : vector<1x1x256xf32> to vector<1x256xf32>
    %6 = vector.shape_cast %3 : vector<1x256xf32> to vector<1x1x256xf32>
    tpu.vector_store %arg4[%c0_4, %c0_5, %c0_6], %6 {strides = array<i32>} : memref<1x1x256xf32, #tpu.memory_space<vmem>>, vector<1x1x256xf32>,
    return
  }
  func.func @transform_0(%arg0: i32, %arg1: i32) -> (i32, i32, i32) {
    %c0_i32 = arith.constant 0 : i32
    %c0_i32_0 = arith.constant 0 : i32
    return %arg0, %arg1, %c0_i32 : i32, i32, i32
  }
  func.func @transform_1(%arg0: i32, %arg1: i32) -> (i32, i32) {
    %c0_i32 = arith.constant 0 : i32
    %c0_i32_0 = arith.constant 0 : i32
    %c0_i32_1 = arith.constant 0 : i32
    return %c0_i32, %c0_i32_0 : i32, i32
  }
  func.func @transform_2(%arg0: i32, %arg1: i32) -> (i32, i32, i32) {
    %c0_i32 = arith.constant 0 : i32
    %c0_i32_0 = arith.constant 0 : i32
    return %arg0, %arg1, %c0_i32 : i32, i32, i32
  }
}

</mosaic_0001>

<bundles_post_ra>
// kernel: tpu_custom_call.1
= control target key start
LH: loop header
LB: loop body
LE: loop exit
PB: predicated region body
PF: predicated region fallthrough
CT: control target
= control target key end

     0   :  { %7 = vsyncpa [#allocation3], 0  ;;  %s672_s0 = inlined_call_operand.hbm [shape: f32[2,1,256], index: 0, kind: input, shape index: {}]   ;;  %s673_s1 = inlined_call_operand.vmem [shape: f32[1,256], index: 1, kind: input, shape index: {}]   ;;  %s674_s2 = inlined_call_operand.hbm [shape: f32[2,1,256], index: 2, kind: output, shape index: {}]  }
   0x1   :  { %9 = vsyncpa [#allocation3 + $0x1], 0 }
   0x2   :  { %10 = vsyncpa [#allocation4], 0 }
   0x3   :  { %12 = vsyncpa [#allocation4 + $0x1], 0  ;;  %s497_s9 = smov 0   ;;  %s499_s10 = smov 0  }
   0x4   :  { %s501_s11 = smov 0   ;;  %s503_s12 = smov 0  }
   0x5   :  { %s505_s13 = smov 0   ;;  %s507_s14 = smov 0  }
   0x6 LB: > { %s287_s15 = sadd.s32 4294967295, %s478_s14   ;;  %s288_s16 = sadd.s32 4294967294, %s478_s14   ;;  %s478_s14 = sphi %s507_s14, %s18_s14   ;;  %s474_s13 = sphi %s505_s13, %s690_s13   ;;  %s470_s12 = sphi %s503_s12, %s689_s12   ;;  %s466_s11 = sphi %s501_s11, %s688_s11   ;;  %s462_s10 = sphi %s499_s10, %s687_s10   ;;  %s458_s9 = sphi %s497_s9, %s686_s9  }
   0x7   : > { %s30_s17 = sadd.s32 1, %s474_s13  ;;  %s39_s18 = sadd.s32 1, %s466_s11 }
   0x8   : > { %p32_p0 = scmp.ge.s32.totalorder %s30_s17, 2  ;;  %p46_p1 = scmp.ne.s32.totalorder %s466_s11, %s462_s10 }
   0x9   : > { %p47_p2 = scmp.eq.s32.totalorder %s478_s14, 0  ;;  %p52_p3 = scmp.ne.s32.totalorder %s462_s10, %s458_s9 }
   0xa   : > { %s692_s17 = smov (%p32_p0, %s30_s17), 0  ;;  %p53_p5 = scmp.eq.s32.totalorder %s287_s15, 0 }
   0xb   : > { %p538_p4 = por %p47_p2, %p46_p1  ;;  %s34_s20 = ssub.s32 %s474_s13, %s692_s17 }
   0xc   : > { %p99_p6 = scmp.eq.s32.totalorder %s287_s15, 1  ;;  %p37_p7 = scmp.eq.s32.totalorder %s34_s20, 0 }
   0xd   : > { %p544_p8 = por %p53_p5, %p52_p3  ;;  %p105_p10 = scmp.eq.s32.totalorder %s288_s16, 1 }
   0xe   : > { %p548_p9 = por %p99_p6, %p46_p1  ;;  %p316_p13 = scmp.lt.s32.totalorder %s478_s14, 2 }
   0xf   : > { %s553_s23 = scalar_select %p37_p7, %s466_s11, %s39_s18  }
  0x10   : > { %s678_s22 = scalar_select %p548_p9, 1, 0 }
  0x11   : > { %p555_p11 = por %p105_p10, %p52_p3  ;;  %s128_s25 = sand.u32 1, %s466_s11  }
  0x12   : > { %s291_s26 = sshll.u32 %s128_s25, 1  ;;  %s302_s27 = sshll.u32 %s474_s13, 5 }
  0x13   : > { %s679_s24 = scalar_select %p555_p11, 1, 0 }
  0x14   : > { %s566_s30 = scalar_lea.hbm %s672_s0, %s302_s27  ;;  %s132_s3 = scalar_lea.vmem [#allocation2], %s291_s26 }
  0x15   : > { %s142_s4 = sshll.u32 %s132_s3, 4  ;;  %p572_p0 = pnand %p316_p13, %p538_p4  ;;  %s568_s4 = int_to_ptr.vmem [resolvable:$true] %s142_s4 }
  0x16   : > { %s129_s6 = scalar_lea.sflag [#allocation3], %s128_s25  ;;  %s366_s7 = scalar_lea.hbm %s566_s30, 32 }
  0x17   : > { %p367_p3 = scmp.ne.s32.totalorder %s566_s30, %s366_s7  ;;  %p368_p5 = pneg %p572_p0 }
  0x18   : > { %s371_s16 = scalar_lea.hbm %s672_s0, 64  ;;  %p372_p4 = scmp.lt.u32.totalorder %s566_s30, %s672_s0 }
  0x19   : > { %p369_p6 = pnand %p368_p5, %p367_p3  ;;  %p373_p10 = scmp.lt.u32.totalorder %s371_s16, %s366_s7 }
  0x1a   : > { %p375_p12 = scmp.lt.u32.totalorder %s366_s7, %s566_s30 }
  0x1b   : > { %p370_p7 = pneg %p369_p6  ;;  %p374_p13 = por %p373_p10, %p372_p4 }
  0x1d   : > { %p376_p1 = por %p375_p12, %p374_p13 }
  0x1f   : > { %p377_p2 = pnand %p376_p1, %p370_p7 }
  0x21   : > { %380 = shalt.err (!%p377_p2)
}
  0x22   : > { %s381_s20 = scalar_lea.vmem %s568_s4, 32  ;;  %s480_s25 = smov [#allocation2]  }
  0x23   : > { %p382_p3 = scmp.ne.s32.totalorder %s568_s4, %s381_s20  ;;  %s386_s26 = sshll.u32 %s480_s25, 4  ;;  %s387_s26 = int_to_ptr.vmem [resolvable:$false] %s386_s26 }
  0x24   : > { %s388_s27 = scalar_lea.vmem %s387_s26, 64  ;;  %p389_p9 = scmp.lt.s32.totalorder %s568_s4, %s387_s26 }
  0x25   : > { %p384_p6 = pnand %p382_p3, %p368_p5  ;;  %p390_p4 = scmp.lt.s32.totalorder %s388_s27, %s381_s20 }
  0x27   : > { %p385_p11 = pneg %p384_p6  ;;  %p391_p10 = por %p390_p4, %p389_p9 }
  0x29   : > { %p392_p12 = pnand %p391_p10, %p385_p11 }
  0x2b   : > { %395 = shalt.err (!%p392_p12)
}
  0x2c   : > { %311 = dma.hbm_to_vmem [thread:$0]  (!%p572_p0), %s566_s30, 32, %s568_s4, %s129_s6  }
  0x2d   : > { %p681_p1 = scmp.lt.s32.totalorder %s478_s14, 3  ;;  %p682_p2 = scmp.ge.s32.totalorder %s478_s14, 1 }
  0x2f   : > { %p148_p5 = pnand %p682_p2, %p681_p1 }
  0x30   : > { %s608_s28 = sand.u32 (!%p148_p5), 1, %s462_s10  }
  0x31   : > { %151 = sbr.rel (%p148_p5) target bundleno = 83 (0x53), region = 28  ;;  %s295_s29 = sshll.u32 (!%p148_p5), %s608_s28, 1 }
  0x32   : > { %s154_s3 = scalar_lea.sflag (!%p148_p5), [#allocation3], %s608_s28  ;;  %s157_s7 = scalar_lea.vmem (!%p148_p5), [#allocation2], %s295_s29 }
  0x38   : > { %449 = dma.done.wait (%p544_p8), %s154_s3, 32  }
  0x39   : > { %451 = vsyncadd (%p544_p8), %s154_s3, 4294967264  ;;  %v181_v0 = vlaneseq  ;;  %s177_s30 = scalar_lea.vmem [#allocation5], %s295_s29  ;;  %s303_s5 = sshll.u32 %s470_s12, 5  ;;  %v178_v1 = vld [vmem:[%s157_s7] sm:$0x3] }
  0x3a   : > { %s203_s4 = sshll.u32 %s177_s30, 4  ;;  %v179_v2 = vld [vmem:[%s673_s1] sm:$0x3]  ;;  %s625_s21 = scalar_lea.hbm %s674_s2, %s303_s5  ;;  %s620_s4 = int_to_ptr.vmem [resolvable:$true] %s203_s4 }
  0x3b   : > { %vm183_vm0 = vcmp.lt.s32.totalorder %v181_v0, 256  ;;  %v180_v3 = vadd.f32 %v179_v2, %v178_v1  ;;  %s187_s18 = scalar_lea.sflag [#allocation4], %s608_s28  ;;  %s396_s12 = scalar_lea.vmem %s620_s4, 32 }
  0x3c   : > { %p397_p8 = scmp.ne.s32.totalorder %s620_s4, %s396_s12  ;;  %p683_p9 = scmp.ne.s32.totalorder %s678_s22, 0 }
  0x3d   : > { %185 = vst.msk [vmem:[%s177_s30] sm:$0x3] %vm183_vm0, %v180_v3  ;;  %s481_s19 = smov [#allocation5]  }
  0x3e   : > { %p398_p11 = pnand %p397_p8, %p683_p9  ;;  %s400_s20 = sshll.u32 %s481_s19, 4  ;;  %s401_s20 = int_to_ptr.vmem [resolvable:$false] %s400_s20 }
  0x3f   : > { %s402_s25 = scalar_lea.vmem %s401_s20, 64  ;;  %p403_p7 = scmp.lt.s32.totalorder %s620_s4, %s401_s20 }
  0x40   : > { %p399_p0 = pneg %p398_p11  ;;  %p404_p13 = scmp.lt.s32.totalorder %s402_s25, %s396_s12 }
  0x42   : > { %p405_p3 = por %p404_p13, %p403_p7 }
  0x44   : > { %p406_p6 = pnand %p405_p3, %p399_p0 }
  0x46   : > { %409 = shalt.err (!%p406_p6)
}
  0x47   : > { %s410_s26 = scalar_lea.hbm %s625_s21, 32  ;;  %s414_s29 = scalar_lea.hbm %s674_s2, 64 }
  0x48   : > { %p411_p4 = scmp.ne.s32.totalorder %s625_s21, %s410_s26  ;;  %p415_p1 = scmp.lt.u32.totalorder %s625_s21, %s674_s2 }
  0x49   : > { %p416_p2 = scmp.lt.u32.totalorder %s414_s29, %s410_s26  ;;  %p418_p8 = scmp.lt.u32.totalorder %s410_s26, %s625_s21 }
  0x4a   : > { %p412_p10 = pnand %p411_p4, %p683_p9 }
  0x4b   : > { %p417_p5 = por %p416_p2, %p415_p1 }
  0x4c   : > { %p413_p12 = pneg %p412_p10 }
  0x4d   : > { %p419_p11 = por %p418_p8, %p417_p5 }
  0x4f   : > { %p420_p0 = pnand %p419_p11, %p413_p12 }
  0x51   : > { %423 = shalt.err (!%p420_p0)
}
  0x52   : > { %306 = dma.vmem_to_hbm [thread:$0]  (%p683_p9), %s620_s4, 32, %s625_s21, %s187_s18  }
  0x53 PF: > { %s215_s30 = sand.u32 1, %s458_s9   ;;  %p684_p7 = scmp.ne.s32.totalorder %s679_s24, 0 }
  0x54   : > { %p685_p13 = scmp.ge.s32.totalorder %s478_s14, 2  ;;  %s216_s5 = scalar_lea.sflag [#allocation4], %s215_s30 }
  0x56   : > { %p313_p3 = pnand %p685_p13, %p684_p7 }
  0x58   : > { %453 = dma.done.wait (!%p313_p3), %s216_s5, 32  }
  0x59   : > { %455 = vsyncadd (!%p313_p3), %s216_s5, 4294967264  ;;  %s18_s14 = sadd.s32 1, %s478_s14   ;;  %s686_s9 = smov %s462_s10 }
  0x5a   : > { %p15_p6 = scmp.ge.s32.totalorder %s18_s14, 4   ;;  %s687_s10 = smov %s466_s11 }
  0x5b   : > { %s688_s11 = smov %s553_s23  ;;  %s689_s12 = smov %s474_s13 }
  0x5c   : > { %s690_s13 = smov %s692_s17  ;;  %17 = sbr.rel (!%p15_p6) target bundleno = 6 (0x6), region = 73 }
  0x63   :  { %221 = vsyncpa [#allocation3], 1 }
  0x64   :  { %223 = vsyncpa [#allocation3 + $0x1], 1 }
  0x65   :  { %224 = vsyncpa [#allocation4], 1 }
  0x66   :  { %226 = vsyncpa [#allocation4 + $0x1], 1 }

</bundles_post_ra>
